<compile_context>
chip_gen: v5e
topology: v5e:2x2
jax: 0.10.0
libtpu: 0.0.40
codegen_flags: <defaults>
</compile_context>

<pallas_src>
import functools

import jax
import jax.numpy as jnp
from jax import lax
from jax.experimental import pallas as pl
from jax.experimental.pallas import tpu as pltpu


def _round_up(x, m):
    return (x + m - 1) // m * m


def _tpu_config():
    """Generation-aware tiling / VMEM-cap choices (safe defaults otherwise)."""
    kind = ""
    try:
        kind = jax.devices()[0].device_kind.lower()
    except Exception:  # no devices visible at trace time -> conservative
        pass
    if "v7" in kind:   # 64 MiB VMEM, 2x256^2 MXU, 2 TC/chip
        return {"fp_align": 256, "tq_pref": 128, "vmem_cap": 48 * 2 ** 20}
    if "v6" in kind:   # 128 MiB VMEM, 2x256^2 MXU
        return {"fp_align": 256, "tq_pref": 256, "vmem_cap": 100 * 2 ** 20}
    if "v5" in kind:   # 128 MiB VMEM, 4x128^2 MXU
        return {"fp_align": 128, "tq_pref": 128, "vmem_cap": 100 * 2 ** 20}
    return {"fp_align": 128, "tq_pref": 128, "vmem_cap": 64 * 2 ** 20}


# --------------------------------------------------------------------------
# Kernel 1: K/V input projections (runs once per sequence tile, not per
# query tile).  Inputs and outputs are bf16; accumulation is f32.
# --------------------------------------------------------------------------
def _kv_proj_kernel(k_ref, v_ref, wkT_ref, bk_ref, wvT_ref, bv_ref,
                    kp_ref, vp_ref):
    K = jnp.dot(k_ref[0], wkT_ref[...],
                preferred_element_type=jnp.float32) + bk_ref[...]
    V = jnp.dot(v_ref[0], wvT_ref[...],
                preferred_element_type=jnp.float32) + bv_ref[...]
    kp_ref[0] = K.astype(kp_ref.dtype)
    vp_ref[0] = V.astype(vp_ref.dtype)


# --------------------------------------------------------------------------
# Kernel 2: Q projection + softmax attention + output projection +
# residual + LayerNorm, per (batch, query-tile) grid step.
# --------------------------------------------------------------------------
def _mhsa_kernel(q_ref, kp_ref, vp_ref,
                 wqT_ref, bq_ref, woT_ref, bo_ref, gamma_ref, beta_ref,
                 out_ref, attn_ref, *, eps, s_valid, f_valid, approx_recip):
    # Blocks: q/out -> (1, Tq, Fp) f32; kp/vp -> (1, Sp, Fp) bf16;
    #         attn -> (1, Tq, Sp).
    q_in = q_ref[0]                              # f32 residual path
    q_bf = q_in.astype(jnp.bfloat16)

    # Q projection; the softmax scale is already folded into wqT / bq.
    Q = jnp.dot(q_bf, wqT_ref[...],
                preferred_element_type=jnp.float32) + bq_ref[...]

    # scores = Q @ K^T without materializing a transpose (contract the feature
    # dim of both operands).
    scores = lax.dot_general(
        Q.astype(jnp.bfloat16), kp_ref[0],
        dimension_numbers=(((1,), (1,)), ((), ())),
        preferred_element_type=jnp.float32)

    if s_valid < scores.shape[-1]:               # static: mask padded keys
        kmask = lax.broadcasted_iota(jnp.int32, scores.shape, 1) < s_valid
        scores = jnp.where(kmask, scores, -1e30)

    scores = scores - jnp.max(scores, axis=-1, keepdims=True)
    e = jnp.exp(scores)
    denom = jnp.sum(e, axis=-1, keepdims=True)
    if approx_recip:
        # EUP approximate reciprocal: rows sum to 1 only to ~1e-3 relative.
        attn = e * pl.reciprocal(denom, approx=True)
    else:
        attn = e / denom
    attn_ref[0] = attn.astype(attn_ref.dtype)

    # context = attn @ V, then output projection (bf16 operands, f32 acc).
    ctx = jnp.dot(attn.astype(jnp.bfloat16), vp_ref[0],
                  preferred_element_type=jnp.float32)
    out = jnp.dot(ctx.astype(jnp.bfloat16), woT_ref[...],
                  preferred_element_type=jnp.float32) + bo_ref[...]

    # Residual + LayerNorm over the true feature width (padded features are 0).
    x = q_in + out
    inv_f = 1.0 / float(f_valid)
    if f_valid < x.shape[-1]:
        fmask = lax.broadcasted_iota(jnp.int32, x.shape, 1) < f_valid
        mu = jnp.sum(x, axis=-1, keepdims=True) * inv_f
        xc = jnp.where(fmask, x - mu, 0.0)
    else:
        mu = jnp.mean(x, axis=-1, keepdims=True)
        xc = x - mu
    var = jnp.sum(xc * xc, axis=-1, keepdims=True) * inv_f
    y = xc * lax.rsqrt(var + eps)
    out_ref[0] = (y * gamma_ref[...] + beta_ref[...]).astype(out_ref.dtype)


def multi_heads_self_attention(key, value, query, params, num_heads=1,
                               attn_dtype=jnp.bfloat16,
                               approx_softmax_recip=True):
    """Forward pass matching the PyTorch module (dropout=0).

    key, value, query: [B, S, F] float32
    Returns (output [B, S, F] float32, attention [B*num_heads, S, S] attn_dtype).
    attention defaults to bfloat16 to halve the O(S^2) store traffic.
    """
    assert num_heads == 1, "kernel implemented for the module's default num_heads=1"
    B, S, F = query.shape
    dim_per_head = F // num_heads

    # scale exactly as the PyTorch code computes it:
    #   (dim_per_head // num_heads) ** -0.5, else 1.
    dph = dim_per_head // num_heads
    scale = (dph ** -0.5) if dph != 0 else 1.0

    cfg = _tpu_config()
    Sp = _round_up(S, 128)
    Fp = _round_up(F, cfg["fp_align"])
    Tq = cfg["tq_pref"] if Sp % cfg["tq_pref"] == 0 else 128
    n_qt = Sp // Tq

    # ---- padding / dtype prep (done once, in the wrapper) -----------------
    def pad_seq(x, dtype):
        return jnp.pad(x.astype(dtype), ((0, 0), (0, Sp - S), (0, Fp - F)))

    def pad_w(w, s=1.0):   # torch [out,in] -> pre-transposed [in,out], bf16
        return jnp.pad((s * w.T).astype(jnp.bfloat16),
                       ((0, Fp - F), (0, Fp - F)))

    def pad_b(b, s=1.0):
        return jnp.pad((s * b).reshape(1, F).astype(jnp.float32),
                       ((0, 0), (0, Fp - F)))

    q_p = pad_seq(query, jnp.float32)       # f32: exact residual path
    k_p = pad_seq(key, jnp.bfloat16)        # bf16: half the DMA / VMEM bytes
    v_p = pad_seq(value, jnp.bfloat16)

    wqT = pad_w(params["wq"], scale)        # softmax scale folded into Wq, bq
    bq = pad_b(params["bq"], scale)
    wkT, wvT, woT = pad_w(params["wk"]), pad_w(params["wv"]), pad_w(params["wo"])
    bk, bv, bo = pad_b(params["bk"]), pad_b(params["bv"]), pad_b(params["bo"])
    gamma, beta = pad_b(params["gamma"]), pad_b(params["beta"])

    # Shared specs (both grids are (batch, tile)).
    w_spec = pl.BlockSpec((Fp, Fp), lambda b, t: (0, 0))
    b_spec = pl.BlockSpec((1, Fp), lambda b, t: (0, 0))

    # ---- pass 1: K/V projections, once per sequence tile ------------------
    Ts = Tq
    n_st = Sp // Ts
    seq_spec_bf16 = pl.BlockSpec((1, Ts, Fp), lambda b, t: (b, t, 0))
    proj_est = (2 * 2 * Ts * Fp * 2        # k, v input tiles (bf16, dbl buf)
                + 2 * 2 * Ts * Fp * 2      # kp, vp output tiles
                + 2 * 2 * Fp * Fp * 2      # wkT, wvT (bf16, dbl buf)
                + 2 * 2 * 8 * Fp * 4       # biases
                + 2 * Ts * Fp * 4)         # f32 temporaries
    proj_vmem = int(min(cfg["vmem_cap"], max(32 * 2 ** 20, int(1.5 * proj_est))))

    kp, vp = pl.pallas_call(
        _kv_proj_kernel,
        out_shape=(jax.ShapeDtypeStruct((B, Sp, Fp), jnp.bfloat16),
                   jax.ShapeDtypeStruct((B, Sp, Fp), jnp.bfloat16)),
        grid_spec=pltpu.PrefetchScalarGridSpec(
            num_scalar_prefetch=0,
            grid=(B, n_st),
            in_specs=[seq_spec_bf16, seq_spec_bf16,
                      w_spec, b_spec, w_spec, b_spec],
            out_specs=[seq_spec_bf16, seq_spec_bf16],
        ),
        compiler_params=pltpu.CompilerParams(
            dimension_semantics=("parallel", "parallel"),
            vmem_limit_bytes=proj_vmem),
    )(k_p, v_p, wkT, bk, wvT, bv)

    # ---- pass 2: attention + output projection + residual + LayerNorm -----
    attn_isz = jnp.dtype(attn_dtype).itemsize
    est = (2 * Tq * Fp * 4                  # q tile (f32, double-buffered)
           + 2 * 2 * Sp * Fp * 2            # projected K, V (bf16, dbl buf)
           + 2 * Tq * Fp * 4                # output tile (f32)
           + 2 * Tq * Sp * attn_isz         # attention tile
           + 2 * 2 * Fp * Fp * 2            # WqT, WoT (bf16, double-buffered)
           + 2 * 5 * 8 * Fp * 4             # biases / gamma / beta
           + (3 * Tq * Fp + 4 * Tq * Sp) * 4)   # in-kernel f32 temporaries
    vmem_limit = int(min(cfg["vmem_cap"], max(32 * 2 ** 20, int(1.5 * est))))

    kernel = functools.partial(_mhsa_kernel, eps=1e-5, s_valid=S, f_valid=F,
                               approx_recip=approx_softmax_recip)

    out_p, attn_p = pl.pallas_call(
        kernel,
        out_shape=(
            jax.ShapeDtypeStruct((B, Sp, Fp), jnp.float32),
            jax.ShapeDtypeStruct((B * num_heads, Sp, Sp), attn_dtype),
        ),
        grid_spec=pltpu.PrefetchScalarGridSpec(
            num_scalar_prefetch=0,
            grid=(B, n_qt),
            in_specs=[
                pl.BlockSpec((1, Tq, Fp), lambda b, t: (b, t, 0)),  # query (f32)
                pl.BlockSpec((1, Sp, Fp), lambda b, t: (b, 0, 0)),  # Kproj (bf16)
                pl.BlockSpec((1, Sp, Fp), lambda b, t: (b, 0, 0)),  # Vproj (bf16)
                w_spec, b_spec,                                     # WqT (scaled), bq
                w_spec, b_spec,                                     # WoT, bo
                b_spec, b_spec,                                     # gamma, beta
            ],
            out_specs=[
                pl.BlockSpec((1, Tq, Fp), lambda b, t: (b, t, 0)),
                pl.BlockSpec((1, Tq, Sp), lambda b, t: (b, t, 0)),
            ],
        ),
        compiler_params=pltpu.CompilerParams(
            dimension_semantics=("parallel", "parallel"),
            vmem_limit_bytes=vmem_limit),
    )(q_p, kp, vp, wqT, bq, woT, bo, gamma, beta)

    out = out_p[:, :S, :F]
    attn = attn_p[:, :S, :S]
    # torch.squeeze(output) in the reference is a no-op for B>1, S>1 shapes;
    # values are identical, shape kept as [B, S, F].
    return out, attn


def init_params(rng, feature_dim):
    F = feature_dim
    keys = jax.random.split(rng, 8)
    s = 0.05
    return {
        "wq": s * jax.random.normal(keys[0], (F, F), jnp.float32),
        "bq": s * jax.random.normal(keys[1], (1, F), jnp.float32),
        "wk": s * jax.random.normal(keys[2], (F, F), jnp.float32),
        "bk": s * jax.random.normal(keys[3], (1, F), jnp.float32),
        "wv": s * jax.random.normal(keys[4], (F, F), jnp.float32),
        "bv": s * jax.random.normal(keys[5], (1, F), jnp.float32),
        "wo": s * jax.random.normal(keys[6], (F, F), jnp.float32),
        "bo": s * jax.random.normal(keys[7], (1, F), jnp.float32),
        "gamma": jnp.ones((1, F), jnp.float32),   # LayerNorm default init
        "beta": jnp.zeros((1, F), jnp.float32),
    }


def _reference(key, value, query, params, num_heads=1, eps=1e-5):
    """Pure-JAX f32 reference mirroring the PyTorch module (dropout=0)."""
    F = query.shape[-1]
    dph = (F // num_heads) // num_heads
    scale = (dph ** -0.5) if dph != 0 else 1.0
    q = query @ params["wq"].T + params["bq"]
    k = key @ params["wk"].T + params["bk"]
    v = value @ params["wv"].T + params["bv"]
    att = jnp.einsum("ijk,ilk->ijl", q, k) * scale
    att = jax.nn.softmax(att, axis=2)
    ctx = jnp.einsum("ijl,ilk->ijk", att, v)
    out = ctx @ params["wo"].T + params["bo"]
    x = query + out
    mu = x.mean(-1, keepdims=True)
    var = ((x - mu) ** 2).mean(-1, keepdims=True)
    y = (x - mu) * jax.lax.rsqrt(var + eps)
    return y * params["gamma"] + params["beta"], att


if __name__ == "__main__":
    B, S, F = 2, 8, 32
    root = jax.random.PRNGKey(0)
    k_p, k_key, k_val, k_qry = jax.random.split(root, 4)

    params = init_params(k_p, F)
    key_x = jax.random.normal(k_key, (B, S, F), jnp.float32)
    value_x = jax.random.normal(k_val, (B, S, F), jnp.float32)
    query_x = jax.random.normal(k_qry, (B, S, F), jnp.float32)

    out, attn = multi_heads_self_attention(key_x, value_x, query_x, params)
    jax.block_until_ready((out, attn))

    assert out.shape == (B, S, F)
    assert attn.shape == (B, S, S)

    ref_out, ref_attn = _reference(key_x, value_x, query_x, params)
    err_out = float(jnp.max(jnp.abs(out - ref_out)))
    err_attn = float(jnp.max(jnp.abs(attn.astype(jnp.float32) - ref_attn)))
    assert err_out < 5e-2 and err_attn < 5e-2, (err_out, err_attn)

    print("KERNEL_OK")
</pallas_src>

<mosaic_0001>
module attributes {stable_mosaic.version = 11 : i64} {
  func.func @_kv_proj_kernel(%arg0: i32, %arg1: i32, %arg2: memref<1x128x128xbf16, #tpu.memory_space<vmem>>, %arg3: memref<1x128x128xbf16, #tpu.memory_space<vmem>>, %arg4: memref<128x128xbf16, #tpu.memory_space<vmem>>, %arg5: memref<1x128xf32, #tpu.memory_space<vmem>>, %arg6: memref<128x128xbf16, #tpu.memory_space<vmem>>, %arg7: memref<1x128xf32, #tpu.memory_space<vmem>>, %arg8: memref<1x128x128xbf16, #tpu.memory_space<vmem>>, %arg9: memref<1x128x128xbf16, #tpu.memory_space<vmem>>) attributes {dimension_semantics = [#tpu.dimension_semantics<parallel>, #tpu.dimension_semantics<parallel>], iteration_bounds = array<i64: 2, 1>, scalar_prefetch = 0 : i64, scratch_operands = 0 : i64, tpu.core_type = #tpu.core_type<tc>, window_params = [{transform_indices = @transform_0, window_bounds = array<i64: 1, 128, 128>}, {transform_indices = @transform_1, window_bounds = array<i64: 1, 128, 128>}, {pipeline_mode = #tpu.pipeline_mode<synchronous>, transform_indices = @transform_2, window_bounds = array<i64: 128, 128>}, {pipeline_mode = #tpu.pipeline_mode<synchronous>, transform_indices = @transform_3, window_bounds = array<i64: 1, 128>}, {pipeline_mode = #tpu.pipeline_mode<synchronous>, transform_indices = @transform_4, window_bounds = array<i64: 128, 128>}, {pipeline_mode = #tpu.pipeline_mode<synchronous>, transform_indices = @transform_5, window_bounds = array<i64: 1, 128>}, {transform_indices = @transform_6, window_bounds = array<i64: 1, 128, 128>}, {transform_indices = @transform_7, window_bounds = array<i64: 1, 128, 128>}]} {
    %c0 = arith.constant 0 : index
    %c0_0 = arith.constant 0 : index
    %c0_1 = arith.constant 0 : index
    %0 = vector.load %arg2[%c0, %c0_0, %c0_1] : memref<1x128x128xbf16, #tpu.memory_space<vmem>>, vector<1x128x128xbf16>
    %1 = vector.shape_cast %0 : vector<1x128x128xbf16> to vector<128x128xbf16>
    %c0_2 = arith.constant 0 : index
    %c0_3 = arith.constant 0 : index
    %2 = vector.load %arg4[%c0_2, %c0_3] : memref<128x128xbf16, #tpu.memory_space<vmem>>, vector<128x128xbf16>
    %cst = arith.constant dense<0.000000e+00> : vector<128x128xf32>
    %3 = tpu.matmul %1, %2, %cst {dimension_numbers = #tpu.dot_dimension_numbers<[1], [0], [0], [1], [0, 0, 1, 1], [], []>} : vector<128x128xbf16>, vector<128x128xbf16>, vector<128x128xf32> -> vector<128x128xf32>
    %c0_4 = arith.constant 0 : index
    %c0_5 = arith.constant 0 : index
    %4 = vector.load %arg5[%c0_4, %c0_5] : memref<1x128xf32, #tpu.memory_space<vmem>>, vector<1x128xf32>
    %5 = vector.broadcast %4 : vector<1x128xf32> to vector<128x128xf32>
    %6 = arith.addf %3, %5 : vector<128x128xf32>
    %c0_6 = arith.constant 0 : index
    %c0_7 = arith.constant 0 : index
    %c0_8 = arith.constant 0 : index
    %7 = vector.load %arg3[%c0_6, %c0_7, %c0_8] : memref<1x128x128xbf16, #tpu.memory_space<vmem>>, vector<1x128x128xbf16>
    %8 = vector.shape_cast %7 : vector<1x128x128xbf16> to vector<128x128xbf16>
    %c0_9 = arith.constant 0 : index
    %c0_10 = arith.constant 0 : index
    %9 = vector.load %arg6[%c0_9, %c0_10] : memref<128x128xbf16, #tpu.memory_space<vmem>>, vector<128x128xbf16>
    %cst_11 = arith.constant dense<0.000000e+00> : vector<128x128xf32>
    %10 = tpu.matmul %8, %9, %cst_11 {dimension_numbers = #tpu.dot_dimension_numbers<[1], [0], [0], [1], [0, 0, 1, 1], [], []>} : vector<128x128xbf16>, vector<128x128xbf16>, vector<128x128xf32> -> vector<128x128xf32>
    %c0_12 = arith.constant 0 : index
    %c0_13 = arith.constant 0 : index
    %11 = vector.load %arg7[%c0_12, %c0_13] : memref<1x128xf32, #tpu.memory_space<vmem>>, vector<1x128xf32>
    %12 = vector.broadcast %11 : vector<1x128xf32> to vector<128x128xf32>
    %13 = arith.addf %10, %12 : vector<128x128xf32>
    %14 = arith.truncf %6 : vector<128x128xf32> to vector<128x128xbf16>
    %c0_14 = arith.constant 0 : index
    %c0_15 = arith.constant 0 : index
    %c0_16 = arith.constant 0 : index
    %15 = vector.load %arg8[%c0_14, %c0_15, %c0_16] : memref<1x128x128xbf16, #tpu.memory_space<vmem>>, vector<1x128x128xbf16>
    %16 = vector.shape_cast %15 : vector<1x128x128xbf16> to vector<128x128xbf16>
    %17 = vector.shape_cast %14 : vector<128x128xbf16> to vector<1x128x128xbf16>
    tpu.vector_store %arg8[%c0_14, %c0_15, %c0_16], %17 {strides = array<i32>} : memref<1x128x128xbf16, #tpu.memory_space<vmem>>, vector<1x128x128xbf16>,
    %18 = arith.truncf %13 : vector<128x128xf32> to vector<128x128xbf16>
    %c0_17 = arith.constant 0 : index
    %c0_18 = arith.constant 0 : index
    %c0_19 = arith.constant 0 : index
    %19 = vector.load %arg9[%c0_17, %c0_18, %c0_19] : memref<1x128x128xbf16, #tpu.memory_space<vmem>>, vector<1x128x128xbf16>
    %20 = vector.shape_cast %19 : vector<1x128x128xbf16> to vector<128x128xbf16>
    %21 = vector.shape_cast %18 : vector<128x128xbf16> to vector<1x128x128xbf16>
    tpu.vector_store %arg9[%c0_17, %c0_18, %c0_19], %21 {strides = array<i32>} : memref<1x128x128xbf16, #tpu.memory_space<vmem>>, vector<1x128x128xbf16>,
    return
  }
  func.func @transform_0(%arg0: i32, %arg1: i32) -> (i32, i32, i32) {
    %c0_i32 = arith.constant 0 : i32
    %c0_i32_0 = arith.constant 0 : i32
    return %arg0, %arg1, %c0_i32 : i32, i32, i32
  }
  func.func @transform_1(%arg0: i32, %arg1: i32) -> (i32, i32, i32) {
    %c0_i32 = arith.constant 0 : i32
    %c0_i32_0 = arith.constant 0 : i32
    return %arg0, %arg1, %c0_i32 : i32, i32, i32
  }
  func.func @transform_2(%arg0: i32, %arg1: i32) -> (i32, i32) {
    %c0_i32 = arith.constant 0 : i32
    %c0_i32_0 = arith.constant 0 : i32
    %c0_i32_1 = arith.constant 0 : i32
    return %c0_i32, %c0_i32_0 : i32, i32
  }
  func.func @transform_3(%arg0: i32, %arg1: i32) -> (i32, i32) {
    %c0_i32 = arith.constant 0 : i32
    %c0_i32_0 = arith.constant 0 : i32
    %c0_i32_1 = arith.constant 0 : i32
    return %c0_i32, %c0_i32_0 : i32, i32
  }
  func.func @transform_4(%arg0: i32, %arg1: i32) -> (i32, i32) {
    %c0_i32 = arith.constant 0 : i32
    %c0_i32_0 = arith.constant 0 : i32
    %c0_i32_1 = arith.constant 0 : i32
    return %c0_i32, %c0_i32_0 : i32, i32
  }
  func.func @transform_5(%arg0: i32, %arg1: i32) -> (i32, i32) {
    %c0_i32 = arith.constant 0 : i32
    %c0_i32_0 = arith.constant 0 : i32
    %c0_i32_1 = arith.constant 0 : i32
    return %c0_i32, %c0_i32_0 : i32, i32
  }
  func.func @transform_6(%arg0: i32, %arg1: i32) -> (i32, i32, i32) {
    %c0_i32 = arith.constant 0 : i32
    %c0_i32_0 = arith.constant 0 : i32
    return %arg0, %arg1, %c0_i32 : i32, i32, i32
  }
  func.func @transform_7(%arg0: i32, %arg1: i32) -> (i32, i32, i32) {
    %c0_i32 = arith.constant 0 : i32
    %c0_i32_0 = arith.constant 0 : i32
    return %arg0, %arg1, %c0_i32 : i32, i32, i32
  }
}

</mosaic_0001>

<bundles_post_ra>
// kernel: tpu_custom_call.1
= control target key start
LH: loop header
LB: loop body
LE: loop exit
PB: predicated region body
PF: predicated region fallthrough
CT: control target
= control target key end

     0   :  { %s2032_s0 = inlined_call_operand.hbm [shape: bf16[2,128,128], index: 0, kind: input, shape index: {}]   ;;  %s2033_s1 = inlined_call_operand.hbm [shape: bf16[2,128,128], index: 1, kind: input, shape index: {}]   ;;  %s2034_s2 = inlined_call_operand.hbm [shape: bf16[128,128], index: 2, kind: input, shape index: {}]   ;;  %s2035_s3 = inlined_call_operand.vmem [shape: f32[1,128], index: 3, kind: input, shape index: {}]   ;;  %s2036_s4 = inlined_call_operand.hbm [shape: bf16[128,128], index: 4, kind: input, shape index: {}]   ;;  %s2037_s5 = inlined_call_operand.vmem [shape: f32[1,128], index: 5, kind: input, shape index: {}]   ;;  %s2038_s6 = inlined_call_operand.hbm [shape: bf16[2,128,128], index: 6, kind: output, shape index: {0}]   ;;  %s2039_s7 = inlined_call_operand.hbm [shape: bf16[2,128,128], index: 7, kind: output, shape index: {1}]  }
   0x1   :  { %2049 = sst [smem:[#allocation25_spill]] %s2034_s2 }
   0x2   :  { %2050 = sst [smem:[#allocation26_spill]] %s2036_s4 }
   0x3   :  { %13 = vsyncpa [#allocation3], 0 }
   0x4   :  { %15 = vsyncpa [#allocation3 + $0x1], 0 }
   0x5   :  { %16 = vsyncpa [#allocation6], 0 }
   0x6   :  { %18 = vsyncpa [#allocation6 + $0x1], 0 }
   0x7   :  { %19 = vsyncpa [#allocation9], 0 }
   0x8   :  { %20 = vsyncpa [#allocation4], 0 }
   0x9   :  { %22 = vsyncpa [#allocation4 + $0x1], 0 }
   0xa   :  { %23 = vsyncpa [#allocation12], 0 }
   0xb   :  { %25 = vsyncpa [#allocation12 + $0x1], 0  ;;  %s1743_s24 = smov 0   ;;  %s1745_s25 = smov 0  }
   0xc   :  { %s1747_s26 = smov 0   ;;  %s1749_s27 = smov 0  }
   0xd   :  { %s1751_s28 = smov 0   ;;  %s1753_s29 = smov 0  }
   0xe LB: > { %2051 = sst [smem:[#allocation19_spill]] %s1675_s24  ;;  %s1774_s30 = sadd.s32 4294967295, %s1695_s29   ;;  %s1695_s29 = sphi %s1753_s29, %s31_s29   ;;  %s1691_s28 = sphi %s1751_s28, %s2071_s28   ;;  %s1687_s27 = sphi %s1749_s27, %s2070_s27   ;;  %s1683_s26 = sphi %s1747_s26, %s2069_s26   ;;  %s1679_s25 = sphi %s1745_s25, %s2073_s25   ;;  %s1675_s24 = sphi %s1743_s24, %s2072_s24  }
   0xf   : > { %2052 = sst [smem:[#allocation20_spill]] %s1683_s26  ;;  %s1050_s8 = sadd.s32 4294967294, %s1695_s29  }
  0x10   : > { %2053 = sst [smem:[#allocation21_spill]] %s1691_s28  ;;  %p65_p0 = scmp.ne.s32.totalorder %s1679_s25, %s1675_s24 }
  0x11   : > { %p66_p1 = scmp.eq.s32.totalorder %s1774_s30, 0  ;;  %p203_p2 = scmp.eq.s32.totalorder %s1774_s30, 1 }
  0x12   : > { %p209_p3 = scmp.eq.s32.totalorder %s1050_s8, 1  ;;  %p1051_p5 = scmp.ge.s32.totalorder %s1695_s29, 1 }
  0x13   : > { %p1783_p4 = por %p66_p1, %p65_p0  ;;  %p244_p7 = scmp.lt.s32.totalorder %s1695_s29, 3 }
  0x14   : > { %p1788_p6 = por %p209_p3, %p65_p0  ;;  %s2057_s2 = sld [smem:[#allocation25_spill]] }
  0x15   : > { %p1796_p8 = pnand %p1051_p5, %p244_p7  ;;  %s1697_s15 = smov [#allocation7]  }
  0x16   : > { %s2055_s10 = scalar_select %p1788_p6, 1, 0 }
  0x17   : > { %p1366_p9 = pneg %p1796_p8  ;;  %s257_s16 = sshll.u32 %s1697_s15, 4  ;;  %s258_s16 = int_to_ptr.vmem [resolvable:$true] %s257_s16 }
  0x18   : > { %2056 = sst [smem:[#allocation22_spill]] %s2055_s10  ;;  %p1054_p11 = scmp.ge.s32.totalorder %s1695_s29, 2 }
  0x19   : > { %p1367_p10 = pnand %p1366_p9, %p66_p1  ;;  %s2059_s4 = sld [smem:[#allocation26_spill]] }
  0x1a   : > { %s255_s13 = sshll.u32 %s2057_s2, 4  ;;  %s2040_s20 = smov 64   ;;  %s256_s13 = int_to_ptr.hbm [resolvable:$true] %s255_s13 }
  0x1b   : > { %s2042_s21 = smov 4   ;;  %s1700_s22 = smov [#allocation8]  }
  0x1c   : > { %1369 = dma.hbm_to_vmem [thread:$0]  (!%p1367_p10), %s256_s13, 1024, %s258_s16, [#allocation6], %s2040_s20, %s2040_s20, %s2042_s21  }
  0x1d   : > { %s274_s23 = sshll.u32 %s1700_s22, 4  ;;  %s43_s8 = sadd.s32 1, %s1691_s28  ;;  %s275_s23 = int_to_ptr.vmem [resolvable:$true] %s274_s23 }
  0x1e   : > { %s52_s11 = sadd.s32 1, %s1683_s26  ;;  %p45_p12 = scmp.ge.s32.totalorder %s43_s8, 2 }
  0x1f   : > { %s272_s19 = sshll.u32 %s2059_s4, 4  ;;  %p59_p13 = scmp.ne.s32.totalorder %s1683_s26, %s1679_s25  ;;  %s273_s19 = int_to_ptr.hbm [resolvable:$true] %s272_s19 }
  0x20   : > { %1372 = dma.hbm_to_vmem [thread:$0]  (!%p1367_p10), %s273_s19, 1024, %s275_s23, [#allocation9], %s2040_s20, %s2040_s20, %s2042_s21  }
  0x21   : > { %p60_p0 = scmp.eq.s32.totalorder %s1695_s29, 0  ;;  %p1389_p3 = scmp.lt.s32.totalorder %s1695_s29, 2 }
  0x22   : > { %s2075_s8 = smov (%p45_p12, %s43_s8), 0  ;;  %p1828_p7 = por %p203_p2, %p59_p13 }
  0x23   : > { %2060 = sst [smem:[#allocation23_spill]] %s2075_s8  ;;  %p1822_p5 = por %p60_p0, %p59_p13 }
  0x24   : > { %s47_s15 = ssub.s32 %s1691_s28, %s2075_s8  ;;  %s291_s16 = sand.u32 1, %s1683_s26  }
  0x25   : > { %p50_p9 = scmp.eq.s32.totalorder %s47_s15, 0  ;;  %s1055_s17 = sshll.u32 %s291_s16, 6 }
  0x26   : > { %s1204_s18 = sshll.u32 %s1691_s28, 6  ;;  %s295_s2 = scalar_lea.vmem [#allocation2], %s1055_s17 }
  0x27   : > { %s1837_s19 = scalar_select %p50_p9, %s1683_s26, %s52_s11  }
  0x28   : > { %s302_s20 = scalar_lea.hbm %s2032_s0, %s1204_s18  ;;  %s305_s4 = sshll.u32 %s295_s2, 4  ;;  %s306_s4 = int_to_ptr.vmem [resolvable:$true] %s305_s4 }
  0x29   : > { %2063 = sst [smem:[#allocation24_spill]] %s1837_s19  ;;  %s303_s21 = sshll.u32 %s302_s20, 4  ;;  %s304_s21 = int_to_ptr.hbm [resolvable:$true] %s303_s21 }
  0x2a   : > { %p1374_p2 = pnand %p1389_p3, %p1822_p5  ;;  %s326_s15 = scalar_lea.hbm %s2033_s1, %s1204_s18 }
  0x2b   : > { %s319_s28 = scalar_lea.vmem [#allocation5], %s1055_s17  ;;  %s327_s19 = sshll.u32 %s326_s15, 4  ;;  %s328_s19 = int_to_ptr.hbm [resolvable:$true] %s327_s19 }
  0x2c   : > { %s329_s11 = sshll.u32 %s319_s28, 4  ;;  %s292_s26 = scalar_lea.sflag [#allocation3], %s291_s16  ;;  %s330_s11 = int_to_ptr.vmem [resolvable:$true] %s329_s11 }
  0x2d   : > { %s2064_s24 = smov 4   ;;  %s2065_s22 = smov 64  }
  0x2e   : > { %1376 = dma.hbm_to_vmem [thread:$0]  (!%p1374_p2), %s304_s21, 1024, %s306_s4, %s292_s26, %s2065_s22, %s2065_s22, %s2064_s24  }
  0x2f   : > { %s315_s2 = sand.u32 1, %s1695_s29   ;;  %341 = sbr.rel (%p1796_p8) target bundleno = 301 (0x12d), region = 44 }
  0x30   : > { %s316_s20 = scalar_lea.sflag [#allocation6], %s315_s2  ;;  %s1859_s28 = sand.u32 (!%p1796_p8), 1, %s1679_s25  }
  0x31   : > { %1379 = dma.hbm_to_vmem [thread:$0]  (!%p1374_p2), %s328_s19, 1024, %s330_s11, %s316_s20, %s2065_s22, %s2065_s22, %s2064_s24  }
  0x32   : > { %s1862_s10 = sshll.u32 (!%p1796_p8), %s1859_s28, 6  ;;  %s344_s4 = scalar_lea.sflag (!%p1796_p8), [#allocation3], %s1859_s28 }
  0x33   : > { %s1866_s26 = scalar_lea.vmem (!%p1796_p8), [#allocation2], %s1862_s10 }
  0x34   : > { %1650 = dma.done.wait (%p1783_p4), %s344_s4, 1024  }
  0x35   : > { %1652 = vsyncadd (%p1783_p4), %s344_s4, 4294966272  ;;  %s353_s24 = sand.u32 1, %s1774_s30   ;;  %s1874_s21 = scalar_lea.vmem [#allocation5], %s1862_s10 }
  0x36   : > { %s354_s14 = scalar_lea.sflag [#allocation6], %s353_s24 }
  0x37   : > { %1654 = dma.done.wait (%p1783_p4), %s354_s14, 1024  }
  0x38   : > { %1656 = vsyncadd (%p1783_p4), %s354_s14, 4294966272 }
  0x39   : > { %1658 = dma.done.wait (%p66_p1), [#allocation6], 1024  }
  0x3a   : > { %1660 = vsyncadd (%p66_p1), [#allocation6], 4294966272 }
  0x3b   : > { %1662 = dma.done.wait (%p66_p1), [#allocation9], 1024  }
  0x3c   : > { %1664 = vsyncadd (%p66_p1), [#allocation9], 4294966272  ;;  %v1221_v0 = vld [vmem:[#allocation7 + $0x38] sm:$0xff]  ;;  %v1220_v2 = vld [vmem:[#allocation7 + $0x30] sm:$0xff]  ;;  %s1919_s16 = scalar_lea.vmem [#allocation10], %s1862_s10  ;;  %s1923_s17 = scalar_lea.vmem [#allocation11], %s1862_s10 }
  0x3d   : > { %v1237_v1 = vld [vmem:[#allocation8 + $0x38] sm:$0xff]  ;;  %545 = vmatpush.bf16.msra.mxu0 %v1221_v0  ;;  %1334 = vmatpush.bf16.msra.mxu2 %v1221_v0  ;;  %v1236_v3 = vld [vmem:[#allocation8 + $0x30] sm:$0xff]  ;;  %v1219_v4 = vld [vmem:[#allocation7 + $0x28] sm:$0xff]  ;;  %s1238_s18 = sshll.u32 %s1687_s27, 6  ;;  %s859_s11 = sshll.u32 %s1919_s16, 4  ;;  %s1971_s11 = int_to_ptr.vmem [resolvable:$true] %s859_s11 }
  0x3e   : > { %726 = vmatpush.bf16.msra.mxu1 %v1237_v1  ;;  %1342 = vmatpush.bf16.msra.mxu3 %v1237_v1  ;;  %v1235_v5 = vld [vmem:[#allocation8 + $0x28] sm:$0xff]  ;;  %v1218_v6 = vld [vmem:[#allocation7 + $0x20] sm:$0xff]  ;;  %v1217_v8 = vld [vmem:[#allocation7 + $0x18] sm:$0xff]  ;;  %s858_s15 = scalar_lea.hbm %s2038_s6, %s1238_s18  ;;  %s878_s22 = sshll.u32 %s1923_s17, 4  ;;  %s1975_s22 = int_to_ptr.vmem [resolvable:$true] %s878_s22 }
  0x3f   : > { %v1234_v7 = vld [vmem:[#allocation8 + $0x20] sm:$0xff]  ;;  %v1233_v9 = vld [vmem:[#allocation8 + $0x18] sm:$0xff]  ;;  %v1216_v10 = vld [vmem:[#allocation7 + $0x10] sm:$0xff]  ;;  %s877_s20 = scalar_lea.hbm %s2039_s7, %s1238_s18  ;;  %s861_s10 = sshll.u32 %s858_s15, 4  ;;  %s862_s10 = int_to_ptr.hbm [resolvable:$true] %s861_s10 }
  0x40   : > { %v1232_v11 = vld [vmem:[#allocation8 + $0x10] sm:$0xff]  ;;  %v1215_v12 = vld [vmem:[#allocation7 + $0x8] sm:$0xff]  ;;  %v1214_v14 = vld [vmem:[#allocation7] sm:$0xff]  ;;  %s880_s4 = sshll.u32 %s877_s20, 4  ;;  %s1583_s24 = sshra.s32 %s862_s10, 4  ;;  %s1980_s4 = int_to_ptr.hbm [resolvable:$true] %s880_s4  ;;  %s1584_s24 = int_to_ptr.hbm [resolvable:$true] %s1583_s24 }
  0x41   : > { %546 = vmatpush.bf16.msra.mxu0 %v1220_v2  ;;  %1335 = vmatpush.bf16.msra.mxu2 %v1220_v2  ;;  %v1231_v13 = vld [vmem:[#allocation8 + $0x8] sm:$0xff]  ;;  %v1230_v15 = vld [vmem:[#allocation8] sm:$0xff]  ;;  %v1208_v24 = vld [vmem:[%s1866_s26 + $0x10] sm:$0xff]  ;;  %s1585_s14 = scalar_lea.hbm %s1584_s24, 64  ;;  %s1589_s9 = scalar_lea.hbm %s2038_s6, 128 }
  0x42   : > { %727 = vmatpush.bf16.msra.mxu1 %v1236_v3  ;;  %1343 = vmatpush.bf16.msra.mxu3 %v1236_v3  ;;  %v1206_v16 = vld [vmem:[%s1866_s26] sm:$0xff]  ;;  %v1207_v20 = vld [vmem:[%s1866_s26 + $0x8] sm:$0xff]  ;;  %v1212_v25 = vld [vmem:[%s1866_s26 + $0x30] sm:$0xff]  ;;  %p1586_p1 = scmp.ne.s32.totalorder %s1584_s24, %s1585_s14  ;;  %p1590_p10 = scmp.lt.s32.totalorder %s1584_s24, %s2038_s6 }
  0x43   : > { %v1210_v17 = vld [vmem:[%s1866_s26 + $0x20] sm:$0xff]  ;;  %v1211_v21 = vld [vmem:[%s1866_s26 + $0x28] sm:$0xff]  ;;  %v1224_v26 = vld [vmem:[%s1874_s21 + $0x10] sm:$0xff]  ;;  %p1591_p12 = scmp.lt.s32.totalorder %s1589_s9, %s1585_s14 }
  0x44   : > { %v1222_v18 = vld [vmem:[%s1874_s21] sm:$0xff]  ;;  %v1223_v22 = vld [vmem:[%s1874_s21 + $0x8] sm:$0xff]  ;;  %v1228_v27 = vld [vmem:[%s1874_s21 + $0x30] sm:$0xff]  ;;  %p1587_p4 = pnand %p1586_p1, %p1828_p7 }
  0x45   : > { %547 = vmatpush.bf16.msra.mxu0 %v1219_v4  ;;  %1336 = vmatpush.bf16.msra.mxu2 %v1219_v4  ;;  %v1226_v19 = vld [vmem:[%s1874_s21 + $0x20] sm:$0xff]  ;;  %v1227_v23 = vld [vmem:[%s1874_s21 + $0x28] sm:$0xff]  ;;  %v1209_v28 = vld [vmem:[%s1866_s26 + $0x18] sm:$0xff]  ;;  %p1592_p13 = por %p1591_p12, %p1590_p10 }
  0x46   : > { %728 = vmatpush.bf16.msra.mxu1 %v1235_v5  ;;  %1344 = vmatpush.bf16.msra.mxu3 %v1235_v5  ;;  %v1213_v29 = vld [vmem:[%s1866_s26 + $0x38] sm:$0xff]  ;;  %v1907_v34 = vld [vmem:[%s2035_s3] ss:$0 sm:$0xff]  ;;  %s840_s26 = scalar_lea.sflag [#allocation4], %s1859_s28  ;;  %p1588_p8 = pneg %p1587_p4 }
  0x47   : > { %v1225_v30 = vld [vmem:[%s1874_s21 + $0x18] sm:$0xff]  ;;  %v1912_v35 = vld [vmem:[%s2037_s5] ss:$0 sm:$0xff] }
  0x48   : > { %v1229_v31 = vld [vmem:[%s1874_s21 + $0x38] sm:$0xff]  ;;  %p1593_p0 = pnand %p1592_p13, %p1588_p8 }
  0x49   : > { %548 = vmatpush.bf16.msra.mxu0 %v1218_v6  ;;  %1337 = vmatpush.bf16.msra.mxu2 %v1218_v6 }
  0x4a   : > { %729 = vmatpush.bf16.msra.mxu1 %v1234_v7  ;;  %1345 = vmatpush.bf16.msra.mxu3 %v1234_v7 }
  0x4d   : > { %549 = vmatpush.bf16.msra.mxu0 %v1217_v8  ;;  %1338 = vmatpush.bf16.msra.mxu2 %v1217_v8 }
  0x4e   : > { %730 = vmatpush.bf16.msra.mxu1 %v1233_v9  ;;  %1346 = vmatpush.bf16.msra.mxu3 %v1233_v9 }
  0x51   : > { %550 = vmatpush.bf16.msra.mxu0 %v1216_v10  ;;  %1339 = vmatpush.bf16.msra.mxu2 %v1216_v10 }
  0x52   : > { %731 = vmatpush.bf16.msra.mxu1 %v1232_v11  ;;  %1347 = vmatpush.bf16.msra.mxu3 %v1232_v11 }
  0x55   : > { %551 = vmatpush.bf16.msra.mxu0 %v1215_v12  ;;  %1340 = vmatpush.bf16.msra.mxu2 %v1215_v12 }
  0x56   : > { %732 = vmatpush.bf16.msra.mxu1 %v1231_v13  ;;  %1348 = vmatpush.bf16.msra.mxu3 %v1231_v13 }
  0x59   : > { %552 = vmatpush.bf16.msra.mxu0 %v1214_v14  ;;  %1341 = vmatpush.bf16.msra.mxu2 %v1214_v14 }
  0x5a   : > { %733 = vmatpush.bf16.msra.mxu1 %v1230_v15  ;;  %1349 = vmatpush.bf16.msra.mxu3 %v1230_v15 }
  0x5c   : > { %553 = vmatmul.bf16.vlgmr.msra.gmra.mxu0 %v1206_v16  ;;  %573 = vmatmul.bf16.vlgmr.msra.gmra.mxu2 %v1210_v17 }
  0x5d   : > { %734 = vmatmul.bf16.vlgmr.msra.gmra.mxu1 %v1222_v18  ;;  %754 = vmatmul.bf16.vlgmr.msra.gmra.mxu3 %v1226_v19 }
  0x6c   : > { %558 = vmatmul.bf16.gmra.mxu0 %v1207_v20  ;;  %578 = vmatmul.bf16.gmra.mxu2 %v1211_v21 }
  0x6d   : > { %739 = vmatmul.bf16.gmra.mxu1 %v1223_v22  ;;  %759 = vmatmul.bf16.gmra.mxu3 %v1227_v23 }
  0x7c   : > { %563 = vmatmul.bf16.gmra.mxu0 %v1208_v24  ;;  %583 = vmatmul.bf16.gmra.mxu2 %v1212_v25 }
  0x7d   : > { %744 = vmatmul.bf16.gmra.mxu1 %v1224_v26  ;;  %764 = vmatmul.bf16.gmra.mxu3 %v1228_v27 }
  0x8c   : > { %568 = vmatmul.bf16.gmra.mxu0 %v1209_v28  ;;  %588 = vmatmul.bf16.gmra.mxu2 %v1213_v29 }
  0x8d   : > { %749 = vmatmul.bf16.gmra.mxu1 %v1225_v30  ;;  %769 = vmatmul.bf16.gmra.mxu3 %v1229_v31 }
  0xd9   : > { %v554_v32 = vpop.f32.mrf.mxu0 }
  0xda   : > { %v735_v33 = vpop.f32.mrf.mxu1  ;;  %v555_v39 = vadd.f32 %v1907_v34, %v554_v32 }
  0xdb   : > { %v736_v42 = vadd.f32 %v1912_v35, %v735_v33 }
  0xdf   : > { %v574_v36 = vpop.f32.mrf.mxu2 }
  0xe0   : > { %v755_v37 = vpop.f32.mrf.mxu3  ;;  %v575_v47 = vadd.f32 %v1907_v34, %v574_v36 }
  0xe1   : > { %v556_v38 = vpop.f32.mrf.mxu0  ;;  %v756_v50 = vadd.f32 %v1912_v35, %v755_v37 }
  0xe2   : > { %v557_v40 = vadd.f32 %v1907_v34, %v556_v38  ;;  %v737_v41 = vpop.f32.mrf.mxu1 }
  0xe3   : > { %v738_v43 = vadd.f32 %v1912_v35, %v737_v41 }
  0xe4   : > { %v1243_v44 = vpack.c.bf16 %v557_v40, %v555_v39 }
  0xe5   : > { %v1283_v45 = vpack.c.bf16 %v738_v43, %v736_v42 }
  0xe6   : > { %1244 = vst [vmem:[%s1919_s16] sm:$0xff] %v1243_v44  }
  0xe7   : > { %1284 = vst [vmem:[%s1923_s17] sm:$0xff] %v1283_v45   ;;  %v576_v46 = vpop.f32.mrf.mxu2 }
  0xe8   : > { %v577_v48 = vadd.f32 %v1907_v34, %v576_v46  ;;  %v757_v49 = vpop.f32.mrf.mxu3 }
  0xe9   : > { %v758_v51 = vadd.f32 %v1912_v35, %v757_v49  ;;  %v559_v52 = vpop.f32.mrf.mxu0 }
  0xea   : > { %v1263_v53 = vpack.c.bf16 %v577_v48, %v575_v47  ;;  %v740_v54 = vpop.f32.mrf.mxu1  ;;  %v560_v59 = vadd.f32 %v1907_v34, %v559_v52 }
  0xeb   : > { %v1303_v55 = vpack.c.bf16 %v758_v51, %v756_v50  ;;  %v741_v62 = vadd.f32 %v1912_v35, %v740_v54 }
  0xec   : > { %1323 = vst [vmem:[%s1919_s16 + $0x20] sm:$0xff] %v1263_v53  }
  0xed   : > { %1330 = vst [vmem:[%s1923_s17 + $0x20] sm:$0xff] %v1303_v55  }
  0xef   : > { %v579_v56 = vpop.f32.mrf.mxu2 }
  0xf0   : > { %v760_v57 = vpop.f32.mrf.mxu3  ;;  %v580_v3 = vadd.f32 %v1907_v34, %v579_v56 }
  0xf1   : > { %v561_v58 = vpop.f32.mrf.mxu0  ;;  %v761_v6 = vadd.f32 %v1912_v35, %v760_v57 }
  0xf2   : > { %v562_v60 = vadd.f32 %v1907_v34, %v561_v58  ;;  %v742_v61 = vpop.f32.mrf.mxu1 }
  0xf3   : > { %v743_v63 = vadd.f32 %v1912_v35, %v742_v61 }
  0xf4   : > { %v1248_v0 = vpack.c.bf16 %v562_v60, %v560_v59 }
  0xf5   : > { %v1288_v1 = vpack.c.bf16 %v743_v63, %v741_v62 }
  0xf6   : > { %1320 = vst [vmem:[%s1919_s16 + $0x8] sm:$0xff] %v1248_v0  }
  0xf7   : > { %1327 = vst [vmem:[%s1923_s17 + $0x8] sm:$0xff] %v1288_v1   ;;  %v581_v2 = vpop.f32.mrf.mxu2 }
  0xf8   : > { %v582_v4 = vadd.f32 %v1907_v34, %v581_v2  ;;  %v762_v5 = vpop.f32.mrf.mxu3 }
  0xf9   : > { %v763_v7 = vadd.f32 %v1912_v35, %v762_v5  ;;  %v564_v8 = vpop.f32.mrf.mxu0 }
  0xfa   : > { %v1268_v9 = vpack.c.bf16 %v582_v4, %v580_v3  ;;  %v745_v10 = vpop.f32.mrf.mxu1  ;;  %v565_v15 = vadd.f32 %v1907_v34, %v564_v8 }
  0xfb   : > { %v1308_v11 = vpack.c.bf16 %v763_v7, %v761_v6  ;;  %v746_v18 = vadd.f32 %v1912_v35, %v745_v10 }
  0xfc   : > { %1324 = vst [vmem:[%s1919_s16 + $0x28] sm:$0xff] %v1268_v9  }
  0xfd   : > { %1331 = vst [vmem:[%s1923_s17 + $0x28] sm:$0xff] %v1308_v11  }
  0xff   : > { %v584_v12 = vpop.f32.mrf.mxu2 }
 0x100   : > { %v765_v13 = vpop.f32.mrf.mxu3  ;;  %v585_v23 = vadd.f32 %v1907_v34, %v584_v12 }
 0x101   : > { %v566_v14 = vpop.f32.mrf.mxu0  ;;  %v766_v26 = vadd.f32 %v1912_v35, %v765_v13 }
 0x102   : > { %v567_v16 = vadd.f32 %v1907_v34, %v566_v14  ;;  %v747_v17 = vpop.f32.mrf.mxu1 }
 0x103   : > { %v748_v19 = vadd.f32 %v1912_v35, %v747_v17 }
 0x104   : > { %v1253_v20 = vpack.c.bf16 %v567_v16, %v565_v15 }
 0x105   : > { %v1293_v21 = vpack.c.bf16 %v748_v19, %v746_v18 }
 0x106   : > { %1321 = vst [vmem:[%s1919_s16 + $0x10] sm:$0xff] %v1253_v20  }
 0x107   : > { %1328 = vst [vmem:[%s1923_s17 + $0x10] sm:$0xff] %v1293_v21   ;;  %v586_v22 = vpop.f32.mrf.mxu2 }
 0x108   : > { %v587_v24 = vadd.f32 %v1907_v34, %v586_v22  ;;  %v767_v25 = vpop.f32.mrf.mxu3 }
 0x109   : > { %v768_v27 = vadd.f32 %v1912_v35, %v767_v25  ;;  %v569_v28 = vpop.f32.mrf.mxu0 }
 0x10a   : > { %v1273_v29 = vpack.c.bf16 %v587_v24, %v585_v23  ;;  %v750_v30 = vpop.f32.mrf.mxu1  ;;  %v570_v37 = vadd.f32 %v1907_v34, %v569_v28 }
 0x10b   : > { %v1313_v31 = vpack.c.bf16 %v768_v27, %v766_v26  ;;  %v751_v40 = vadd.f32 %v1912_v35, %v750_v30 }
 0x10c   : > { %1325 = vst [vmem:[%s1919_s16 + $0x30] sm:$0xff] %v1273_v29  }
 0x10d   : > { %1332 = vst [vmem:[%s1923_s17 + $0x30] sm:$0xff] %v1313_v31  }
 0x10f   : > { %v589_v32 = vpop.f32.mrf.mxu2 }
 0x110   : > { %v770_v33 = vpop.f32.mrf.mxu3  ;;  %v590_v45 = vadd.f32 %v1907_v34, %v589_v32 }
 0x111   : > { %v571_v36 = vpop.f32.mrf.mxu0  ;;  %v771_v48 = vadd.f32 %v1912_v35, %v770_v33 }
 0x112   : > { %v572_v38 = vadd.f32 %v1907_v34, %v571_v36  ;;  %v752_v39 = vpop.f32.mrf.mxu1 }
 0x113   : > { %v753_v41 = vadd.f32 %v1912_v35, %v752_v39 }
 0x114   : > { %v1258_v42 = vpack.c.bf16 %v572_v38, %v570_v37 }
 0x115   : > { %v1298_v43 = vpack.c.bf16 %v753_v41, %v751_v40 }
 0x116   : > { %1322 = vst [vmem:[%s1919_s16 + $0x18] sm:$0xff] %v1258_v42  }
 0x117   : > { %1329 = vst [vmem:[%s1923_s17 + $0x18] sm:$0xff] %v1298_v43   ;;  %v591_v44 = vpop.f32.mrf.mxu2 }
 0x118   : > { %v592_v46 = vadd.f32 %v1907_v34, %v591_v44  ;;  %v772_v47 = vpop.f32.mrf.mxu3 }
 0x119   : > { %v773_v49 = vadd.f32 %v1912_v35, %v772_v47 }
 0x11a   : > { %v1278_v50 = vpack.c.bf16 %v592_v46, %v590_v45 }
 0x11b   : > { %v1318_v51 = vpack.c.bf16 %v773_v49, %v771_v48 }
 0x11c   : > { %1326 = vst [vmem:[%s1919_s16 + $0x38] sm:$0xff] %v1278_v50  }
 0x11d   : > { %1333 = vst [vmem:[%s1923_s17 + $0x38] sm:$0xff] %v1318_v51  }
 0x11e   : > { %1596 = shalt.err (!%p1593_p0)
}
 0x11f   : > { %s1701_s16 = smov 64   ;;  %s1702_s17 = smov 4  }
 0x120   : > { %1362 = dma.vmem_to_hbm [thread:$0]  (%p1828_p7), %s1971_s11, 1024, %s862_s10, %s840_s26, %s1701_s16, %s1701_s16, %s1702_s17  }
 0x121   : > { %s845_s18 = scalar_lea.sflag [#allocation12], %s1859_s28  ;;  %s1611_s19 = sshra.s32 %s1980_s4, 4  ;;  %s1612_s19 = int_to_ptr.hbm [resolvable:$true] %s1611_s19 }
 0x122   : > { %s1613_s23 = scalar_lea.hbm %s1612_s19, 64  ;;  %s1617_s27 = scalar_lea.hbm %s2039_s7, 128 }
 0x123   : > { %p1614_p3 = scmp.ne.s32.totalorder %s1612_s19, %s1613_s23  ;;  %p1618_p2 = scmp.lt.s32.totalorder %s1612_s19, %s2039_s7 }
 0x124   : > { %p1619_p1 = scmp.lt.s32.totalorder %s1617_s27, %s1613_s23 }
 0x125   : > { %p1615_p5 = pnand %p1614_p3, %p1828_p7 }
 0x126   : > { %p1620_p4 = por %p1619_p1, %p1618_p2 }
 0x127   : > { %p1616_p9 = pneg %p1615_p5 }
 0x129   : > { %p1621_p8 = pnand %p1620_p4, %p1616_p9 }
 0x12b   : > { %1624 = shalt.err (!%p1621_p8)
}
 0x12c   : > { %1363 = dma.vmem_to_hbm [thread:$0]  (%p1828_p7), %s1975_s22, 1024, %s1980_s4, %s845_s18, %s1701_s16, %s1701_s16, %s1702_s17  }
 0x12d PF: > { %s2066_s28 = sld [smem:[#allocation19_spill]]  ;;  %p1381_p10 = pnand %p1054_p11, %p1788_p6 }
 0x12f   : > { %p1382_p12 = pneg %p1381_p10 }
 0x133   : > { %s895_s10 = sand.u32 1, %s2066_s28  }
 0x134   : > { %s896_s26 = scalar_lea.sflag [#allocation4], %s895_s10 }
 0x135   : > { %1666 = dma.done.wait (%p1382_p12), %s896_s26, 1024  }
 0x136   : > { %1668 = vsyncadd (%p1382_p12), %s896_s26, 4294966272  ;;  %s906_s14 = scalar_lea.sflag [#allocation12], %s895_s10 }
 0x137   : > { %1670 = dma.done.wait (%p1382_p12), %s906_s14, 1024  }
 0x138   : > { %1672 = vsyncadd (%p1382_p12), %s906_s14, 4294966272  ;;  %s31_s29 = sadd.s32 1, %s1695_s29   ;;  %s2068_s13 = sld [smem:[#allocation20_spill]] }
 0x139   : > { %p28_p13 = scmp.ge.s32.totalorder %s31_s29, 4   ;;  %s2069_s26 = sld [smem:[#allocation24_spill]] }
 0x13a   : > { %s2070_s27 = sld [smem:[#allocation21_spill]]  ;;  %s2072_s24 = smov %s1679_s25 }
 0x13b   : > { %s2071_s28 = sld [smem:[#allocation23_spill]]  ;;  %30 = sbr.rel (!%p28_p13) target bundleno = 14 (0xe), region = 127 }
 0x13e   : > { %s2073_s25 = smov %s2068_s13 }
 0x140   :  { %912 = vsyncpa [#allocation3], 1 }
 0x141   :  { %914 = vsyncpa [#allocation3 + $0x1], 1 }
 0x142   :  { %915 = vsyncpa [#allocation6], 1 }
 0x143   :  { %917 = vsyncpa [#allocation6 + $0x1], 1 }
 0x144   :  { %918 = vsyncpa [#allocation9], 1 }
 0x145   :  { %919 = vsyncpa [#allocation4], 1 }
 0x146   :  { %921 = vsyncpa [#allocation4 + $0x1], 1 }
 0x147   :  { %922 = vsyncpa [#allocation12], 1 }
 0x148   :  { %924 = vsyncpa [#allocation12 + $0x1], 1 }

</bundles_post_ra>
